<compile_context>
chip_gen: v7x
topology: tpu7x:2x2x1
jax: 0.10.0
libtpu: 0.0.40
codegen_flags: <defaults>
</compile_context>

<pallas_src>
import functools

import jax
import jax.numpy as jnp
from jax.experimental import pallas as pl
from jax.experimental.pallas import tpu as pltpu


def _round_up(x, m):
    return ((x + m - 1) // m) * m


def _vmem_capacity_bytes():
    try:
        info = pltpu.get_tpu_info()
        for attr in ("vmem_capacity_bytes", "vmem_bytes", "vmem_size_bytes"):
            v = getattr(info, attr, None)
            if v:
                return int(v)
    except Exception:
        pass
    return 64 * 1024 * 1024          # conservative fallback (v7x per-TC size)


def _vmem_plan():
    cap = _vmem_capacity_bytes()
    if cap >= 96 * 1024 * 1024:      # v5e / v6e: 128 MiB physical VMEM
        return {"limit": 96 * 1024 * 1024,
                "budget": 32 * 1024 * 1024,
                "tile_target": 8192}
    # v7x: 64 MiB per TensorCore -> keep the conservative 32 MiB scoped limit.
    return {"limit": 32 * 1024 * 1024,
            "budget": 12 * 1024 * 1024,
            "tile_target": 4096}


def _pick_tile(total, quantum, target, min_steps=1):
    """Largest multiple of `quantum` dividing `total`, <= `target`, and (when
    possible) leaving at least `min_steps` grid steps.

    Falls back to the full extent `total` (always a legal block shape; also
    avoids reading padded garbage when `total` is not a multiple of `quantum`).
    """
    if total % quantum != 0:
        # TODO(synk): pad+mask instead of a full-extent block for very large
        #             non-128-multiple spatial sizes.
        return total
    cap = min(int(target), total)
    if min_steps > 1 and total >= min_steps * quantum:
        cap = min(cap, total // min_steps)
    cap = max(cap, quantum)
    best = quantum
    t = quantum
    while t <= cap:
        if total % t == 0:
            best = t
        t += quantum
    return best


# ----------------------------------------------------------------------------
# Kernel A: streaming spatial partial sums (per sample).
#   x block   : (tr, thw)   rows = flattened (batch, channel), lanes = spatial
#   acc block : (tr, 128)   f32 accumulator, resident across the HW grid axis
#   Per step the work is one VPU add per loaded vreg (no per-step XLU reduce);
#   the single 128-lane reduce + 1/HW scale happens in the wrapper.
# ----------------------------------------------------------------------------
def _spatial_sum_kernel(x_ref, acc_ref):
    @pl.when(pl.program_id(1) == 0)
    def _():
        acc_ref[...] = jnp.zeros_like(acc_ref)

    x = x_ref[...].astype(jnp.float32)
    thw = x.shape[-1]
    nfull = thw // 128
    acc = acc_ref[...]
    for j in range(nfull):
        acc = acc + x[:, j * 128:(j + 1) * 128]
    rem = thw - nfull * 128
    if rem:  # only traced when HW is not a multiple of 128 (full-extent block)
        tail = jnp.concatenate(
            [x[:, nfull * 128:],
             jnp.zeros((x.shape[0], 128 - rem), jnp.float32)], axis=-1)
        acc = acc + tail
    acc_ref[...] = acc


# ----------------------------------------------------------------------------
# Kernel B: data-dependent 1x1 conv (per sample).
#   out[k, m, t] = sum_c w[m, c] * x[k, c, t]
#   w block : (B, cin) f32 (constant)     x block : (tb, cin, thw)
#   o block : (tb, B, thw)
#   Small cin -> VPU broadcast-FMA over the whole block (HBM-bound regime);
#   large cin -> a few per-batch MXU dots (tb <= B is small).
# ----------------------------------------------------------------------------
def _apply_kernel(w_ref, x_ref, o_ref, *, use_mxu):
    if use_mxu:
        w = w_ref[...].astype(x_ref.dtype)
        for k in range(x_ref.shape[0]):         # tb <= batch (small)
            o_ref[k] = jnp.dot(
                w, x_ref[k], preferred_element_type=jnp.float32
            ).astype(o_ref.dtype)
    else:
        w = w_ref[...]                           # (B, cin) f32
        x = x_ref[...].astype(jnp.float32)       # (tb, cin, thw)
        cin = x.shape[1]
        acc = w[None, :, 0:1] * x[:, 0:1, :]     # (tb, B, thw)
        for c in range(1, cin):
            acc = acc + w[None, :, c:c + 1] * x[:, c:c + 1, :]
        o_ref[...] = acc.astype(o_ref.dtype)


def average_pool_forward1(xs, w1, b1):
    """xs: list of S arrays, each (B, cin, H, W).  Returns list of (B, B, H, W)."""
    S = len(xs)
    B, cin, H, W = xs[0].shape
    HW = H * W
    cout = w1.shape[0]
    assert w1.shape[1] == cin * S
    assert cin == cout, "F.conv2d(x[i], weight=(B,cout,1,1)) requires cin == cout"

    dtype = xs[0].dtype
    in_item = jnp.dtype(dtype).itemsize
    plan = _vmem_plan()
    budget, limit, tile_target = plan["budget"], plan["limit"], plan["tile_target"]

    # ---- Kernel A: per-sample spatial partial sums --------------------------
    R = B * cin
    thw_a = _pick_tile(HW, 128, tile_target)
    thw_a_pad = _round_up(thw_a, 128)
    # per-row VMEM: double-buffered input + f32 upcast + (tr,128) f32 accumulator
    row_bytes = 2 * in_item * thw_a_pad + 4 * thw_a_pad + 2 * 4 * 128
    tr_cap = max(8, budget // row_bytes)
    tr = _pick_tile(R, 8, tr_cap, min_steps=2)

    sum_fn = pl.pallas_call(
        _spatial_sum_kernel,
        out_shape=jax.ShapeDtypeStruct((R, 128), jnp.float32),
        grid=(R // tr, HW // thw_a),
        in_specs=[pl.BlockSpec((tr, thw_a), lambda r, h: (r, h))],
        out_specs=pl.BlockSpec((tr, 128), lambda r, h: (r, 0)),
        compiler_params=pltpu.CompilerParams(
            dimension_semantics=("parallel", "arbitrary"),
            vmem_limit_bytes=limit,
        ),
    )

    inv_hw = 1.0 / HW
    means = []
    for x in xs:
        part = sum_fn(x.reshape(R, HW))                     # (R, 128) partial sums
        means.append((part.sum(axis=-1) * inv_hw).reshape(B, cin))
    xmean_bc = jnp.concatenate(means, axis=1)               # (B, S*cin), cat(dim=1) order

    # ---- Weights: tiny matmul + bias in plain jnp (no kernel launch) ---------
    wts = xmean_bc @ w1.astype(jnp.float32).T + b1.astype(jnp.float32)[None, :]
    # (B, cout) kept in f32 — matches the PyTorch reference precision.

    # ---- Kernel B: batched data-dependent 1x1 conv, per sample ---------------
    out_item = in_item
    use_mxu = cin >= 16
    upcast = 4 * _round_up(cin, 8) if (not use_mxu and in_item < 4) else 0
    per_b_col = (2 * in_item * _round_up(cin, 8) + upcast
                 + (2 * out_item + 4) * _round_up(B, 8))
    tb = _pick_tile(B, 1, max(1, budget // (per_b_col * 128)))
    thw_cap = max(128, budget // (per_b_col * tb))
    thw_b = _pick_tile(HW, 128, min(tile_target, thw_cap), min_steps=2)

    apply_fn = pl.pallas_call(
        functools.partial(_apply_kernel, use_mxu=use_mxu),
        out_shape=jax.ShapeDtypeStruct((B, B, HW), dtype),
        grid=(B // tb, HW // thw_b),
        in_specs=[
            pl.BlockSpec((B, cin), lambda b, h: (0, 0)),            # weights (f32)
            pl.BlockSpec((tb, cin, thw_b), lambda b, h: (b, 0, h)),
        ],
        out_specs=pl.BlockSpec((tb, B, thw_b), lambda b, h: (b, 0, h)),
        compiler_params=pltpu.CompilerParams(
            dimension_semantics=("parallel", "parallel"),
            vmem_limit_bytes=limit,
        ),
    )

    outs = []
    for x in xs:
        y = apply_fn(wts, x.reshape(B, cin, HW))
        outs.append(y.reshape(B, B, H, W))
    return outs


if __name__ == "__main__":
    # Small deterministic setup: batch=2, cin=cout=4, sample_num=2, spatial=16x16
    B, cin, cout, S, H, W = 2, 4, 4, 2, 16, 16

    key = jax.random.PRNGKey(0)
    k_w, k_b, *k_xs = jax.random.split(key, 2 + S)

    # nn.Conv2d(cin*S, cout, kernel_size=1) parameters (1x1 conv -> dense matrix)
    w1 = jax.random.normal(k_w, (cout, cin * S), dtype=jnp.float32) * 0.1
    b1 = jax.random.normal(k_b, (cout,), dtype=jnp.float32) * 0.1

    xs = [jax.random.normal(k, (B, cin, H, W), dtype=jnp.float32) for k in k_xs]

    # jit the wrapper so the (B,cin,H,W)->(B*cin,HW) collapses stay bitcasts
    # (no extra HBM copies) and the tiny mean-finalize / weights matmul fuse.
    fwd = jax.jit(average_pool_forward1)
    outs = fwd(xs, w1, b1)
    outs = [jax.block_until_ready(o) for o in outs]

    assert len(outs) == S
    assert all(o.shape == (B, B, H, W) for o in outs)

    # Pure-JAX reference check (same math as the PyTorch module).
    xcat = jnp.concatenate(xs, axis=1)
    feats = jnp.einsum("oc,bchw->bohw", w1, xcat) + b1[None, :, None, None]
    weights = feats.mean(axis=(-1, -2))
    refs = [jnp.einsum("mc,bchw->bmhw", weights, x) for x in xs]
    for o, r in zip(outs, refs):
        assert jnp.allclose(o, r, atol=1e-4, rtol=1e-4), "mismatch vs reference"

    print("KERNEL_OK")
</pallas_src>

<mosaic_0001>
module attributes {stable_mosaic.version = 11 : i64} {
  func.func @_spatial_sum_kernel(%arg0: i32, %arg1: i32, %arg2: memref<8x256xf32, #tpu.memory_space<vmem>>, %arg3: memref<8x128xf32, #tpu.memory_space<vmem>>) attributes {dimension_semantics = [#tpu.dimension_semantics<parallel>, #tpu.dimension_semantics<arbitrary>], iteration_bounds = array<i64: 1, 1>, scalar_prefetch = 0 : i64, scratch_operands = 0 : i64, tpu.core_type = #tpu.core_type<tc>, window_params = [{transform_indices = @transform_0, window_bounds = array<i64: 8, 256>}, {transform_indices = @transform_1, window_bounds = array<i64: 8, 128>}]} {
    %c0_i32 = arith.constant 0 : i32
    %0 = arith.cmpi eq, %arg1, %c0_i32 : i32
    %1 = arith.extui %0 : i1 to i32
    %c0_i32_0 = arith.constant 0 : i32
    %2 = arith.cmpi ne, %1, %c0_i32_0 : i32
    scf.if %2 {
      %cst = arith.constant 0.000000e+00 : f32
      %10 = vector.broadcast %cst : f32 to vector<8x128xf32>
      %c0_6 = arith.constant 0 : index
      %c0_7 = arith.constant 0 : index
      %11 = vector.load %arg3[%c0_6, %c0_7] : memref<8x128xf32, #tpu.memory_space<vmem>>, vector<8x128xf32>
      tpu.vector_store %arg3[%c0_6, %c0_7], %10 {strides = array<i32>} : memref<8x128xf32, #tpu.memory_space<vmem>>, vector<8x128xf32>,
    } else {
    }
    %c0 = arith.constant 0 : index
    %c0_1 = arith.constant 0 : index
    %3 = vector.load %arg2[%c0, %c0_1] : memref<8x256xf32, #tpu.memory_space<vmem>>, vector<8x256xf32>
    %c0_2 = arith.constant 0 : index
    %c0_3 = arith.constant 0 : index
    %4 = vector.load %arg3[%c0_2, %c0_3] : memref<8x128xf32, #tpu.memory_space<vmem>>, vector<8x128xf32>
    %5 = vector.extract_strided_slice %3 {offsets = [0, 0], sizes = [8, 128], strides = [1, 1]} : vector<8x256xf32> to vector<8x128xf32>
    %6 = arith.addf %4, %5 : vector<8x128xf32>
    %7 = vector.extract_strided_slice %3 {offsets = [0, 128], sizes = [8, 128], strides = [1, 1]} : vector<8x256xf32> to vector<8x128xf32>
    %8 = arith.addf %6, %7 : vector<8x128xf32>
    %c0_4 = arith.constant 0 : index
    %c0_5 = arith.constant 0 : index
    %9 = vector.load %arg3[%c0_4, %c0_5] : memref<8x128xf32, #tpu.memory_space<vmem>>, vector<8x128xf32>
    tpu.vector_store %arg3[%c0_4, %c0_5], %8 {strides = array<i32>} : memref<8x128xf32, #tpu.memory_space<vmem>>, vector<8x128xf32>,
    return
  }
  func.func @transform_0(%arg0: i32, %arg1: i32) -> (i32, i32) {
    %c0_i32 = arith.constant 0 : i32
    return %arg0, %arg1 : i32, i32
  }
  func.func @transform_1(%arg0: i32, %arg1: i32) -> (i32, i32) {
    %c0_i32 = arith.constant 0 : i32
    %c0_i32_0 = arith.constant 0 : i32
    return %arg0, %c0_i32 : i32, i32
  }
}

module attributes {stable_mosaic.version = 11 : i64} {
  func.func @_apply_kernel(%arg0: i32, %arg1: i32, %arg2: memref<2x4xf32, #tpu.memory_space<vmem>>, %arg3: memref<2x4x128xf32, #tpu.memory_space<vmem>>, %arg4: memref<2x2x128xf32, #tpu.memory_space<vmem>>) attributes {dimension_semantics = [#tpu.dimension_semantics<parallel>, #tpu.dimension_semantics<parallel>], iteration_bounds = array<i64: 1, 2>, scalar_prefetch = 0 : i64, scratch_operands = 0 : i64, tpu.core_type = #tpu.core_type<tc>, window_params = [{pipeline_mode = #tpu.pipeline_mode<synchronous>, transform_indices = @transform_0, window_bounds = array<i64: 2, 4>}, {transform_indices = @transform_1, window_bounds = array<i64: 2, 4, 128>}, {transform_indices = @transform_2, window_bounds = array<i64: 2, 2, 128>}]} {
    %c0 = arith.constant 0 : index
    %c0_0 = arith.constant 0 : index
    %0 = vector.load %arg2[%c0, %c0_0] : memref<2x4xf32, #tpu.memory_space<vmem>>, vector<2x4xf32>
    %c0_1 = arith.constant 0 : index
    %c0_2 = arith.constant 0 : index
    %c0_3 = arith.constant 0 : index
    %1 = vector.load %arg3[%c0_1, %c0_2, %c0_3] : memref<2x4x128xf32, #tpu.memory_space<vmem>>, vector<2x4x128xf32>
    %2 = vector.extract_strided_slice %0 {offsets = [0, 0], sizes = [2, 1], strides = [1, 1]} : vector<2x4xf32> to vector<2x1xf32>
    %3 = vector.shape_cast %2 : vector<2x1xf32> to vector<1x2x1xf32>
    %4 = vector.extract_strided_slice %1 {offsets = [0, 0, 0], sizes = [2, 1, 128], strides = [1, 1, 1]} : vector<2x4x128xf32> to vector<2x1x128xf32>
    %5 = vector.broadcast %3 : vector<1x2x1xf32> to vector<2x2x128xf32>
    %6 = vector.broadcast %4 : vector<2x1x128xf32> to vector<2x2x128xf32>
    %7 = arith.mulf %5, %6 : vector<2x2x128xf32>
    %8 = vector.extract_strided_slice %0 {offsets = [0, 1], sizes = [2, 1], strides = [1, 1]} : vector<2x4xf32> to vector<2x1xf32>
    %9 = vector.shape_cast %8 : vector<2x1xf32> to vector<1x2x1xf32>
    %10 = vector.extract_strided_slice %1 {offsets = [0, 1, 0], sizes = [2, 1, 128], strides = [1, 1, 1]} : vector<2x4x128xf32> to vector<2x1x128xf32>
    %11 = vector.broadcast %9 : vector<1x2x1xf32> to vector<2x2x128xf32>
    %12 = vector.broadcast %10 : vector<2x1x128xf32> to vector<2x2x128xf32>
    %13 = arith.mulf %11, %12 : vector<2x2x128xf32>
    %14 = arith.addf %7, %13 : vector<2x2x128xf32>
    %15 = vector.extract_strided_slice %0 {offsets = [0, 2], sizes = [2, 1], strides = [1, 1]} : vector<2x4xf32> to vector<2x1xf32>
    %16 = vector.shape_cast %15 : vector<2x1xf32> to vector<1x2x1xf32>
    %17 = vector.extract_strided_slice %1 {offsets = [0, 2, 0], sizes = [2, 1, 128], strides = [1, 1, 1]} : vector<2x4x128xf32> to vector<2x1x128xf32>
    %18 = vector.broadcast %16 : vector<1x2x1xf32> to vector<2x2x128xf32>
    %19 = vector.broadcast %17 : vector<2x1x128xf32> to vector<2x2x128xf32>
    %20 = arith.mulf %18, %19 : vector<2x2x128xf32>
    %21 = arith.addf %14, %20 : vector<2x2x128xf32>
    %22 = vector.extract_strided_slice %0 {offsets = [0, 3], sizes = [2, 1], strides = [1, 1]} : vector<2x4xf32> to vector<2x1xf32>
    %23 = vector.shape_cast %22 : vector<2x1xf32> to vector<1x2x1xf32>
    %24 = vector.extract_strided_slice %1 {offsets = [0, 3, 0], sizes = [2, 1, 128], strides = [1, 1, 1]} : vector<2x4x128xf32> to vector<2x1x128xf32>
    %25 = vector.broadcast %23 : vector<1x2x1xf32> to vector<2x2x128xf32>
    %26 = vector.broadcast %24 : vector<2x1x128xf32> to vector<2x2x128xf32>
    %27 = arith.mulf %25, %26 : vector<2x2x128xf32>
    %28 = arith.addf %21, %27 : vector<2x2x128xf32>
    %c0_4 = arith.constant 0 : index
    %c0_5 = arith.constant 0 : index
    %c0_6 = arith.constant 0 : index
    %29 = vector.load %arg4[%c0_4, %c0_5, %c0_6] : memref<2x2x128xf32, #tpu.memory_space<vmem>>, vector<2x2x128xf32>
    tpu.vector_store %arg4[%c0_4, %c0_5, %c0_6], %28 {strides = array<i32>} : memref<2x2x128xf32, #tpu.memory_space<vmem>>, vector<2x2x128xf32>,
    return
  }
  func.func @transform_0(%arg0: i32, %arg1: i32) -> (i32, i32) {
    %c0_i32 = arith.constant 0 : i32
    %c0_i32_0 = arith.constant 0 : i32
    %c0_i32_1 = arith.constant 0 : i32
    return %c0_i32, %c0_i32_0 : i32, i32
  }
  func.func @transform_1(%arg0: i32, %arg1: i32) -> (i32, i32, i32) {
    %c0_i32 = arith.constant 0 : i32
    %c0_i32_0 = arith.constant 0 : i32
    return %arg0, %c0_i32, %arg1 : i32, i32, i32
  }
  func.func @transform_2(%arg0: i32, %arg1: i32) -> (i32, i32, i32) {
    %c0_i32 = arith.constant 0 : i32
    %c0_i32_0 = arith.constant 0 : i32
    return %arg0, %c0_i32, %arg1 : i32, i32, i32
  }
}

</mosaic_0001>

<bundles_post_ra>
// kernel: average_pool_forward1.4
= control target key start
LH: loop header
LB: loop body
LE: loop exit
PB: predicated region body
PF: predicated region fallthrough
CT: control target
= control target key end

     0   :  { %s43_s0 = inlined_call_operand.vmem [shape: f32[8,256], index: 0, kind: input, shape index: {}]   ;;  %s44_s1 = inlined_call_operand.vmem [shape: f32[8,128], index: 1, kind: output, shape index: {}]  }
   0x1   :  { %v13_v0 = vld [vmem:[%s43_s0] sm:$0xff]  ;;  %v14_v1 = vld [vmem:[%s43_s0 + $0x8] sm:$0xff] }
   0x2   :  { %v17_v2 = vadd.f32 %v14_v1, %v13_v0 }
   0x4   :  { %18 = vst [vmem:[%s44_s1] sm:$0xff] %v17_v2 }

// kernel: average_pool_forward1.7
= control target key start
LH: loop header
LB: loop body
LE: loop exit
PB: predicated region body
PF: predicated region fallthrough
CT: control target
= control target key end

     0   :  { %s509_s9 = smov 0   ;;  %s511_s10 = smov 0   ;;  %s584_s0 = inlined_call_operand.vmem [shape: f32[2,4], index: 0, kind: input, shape index: {}]   ;;  %s585_s1 = inlined_call_operand.vmem [shape: f32[2,4,256], index: 1, kind: input, shape index: {}]   ;;  %s586_s2 = inlined_call_operand.vmem [shape: f32[2,2,256], index: 2, kind: output, shape index: {}]  }
   0x1   :  { %s513_s11 = smov 0   ;;  %s515_s12 = smov 0  }
   0x2   :  { %s517_s13 = smov 0  }
   0x3 LB: > { %s21_s14 = sadd.s32 1, %s484_s12  ;;  %s388_s15 = sadd.s32 4294967295, %s488_s13   ;;  %s488_s13 = sphi %s517_s13, %s12_s13   ;;  %s484_s12 = sphi %s515_s12, %s591_s12   ;;  %s480_s11 = sphi %s513_s11, %s590_s11   ;;  %s476_s10 = sphi %s511_s10, %s589_s10   ;;  %s472_s9 = sphi %s509_s9, %s588_s9  }
   0x4   : > { %p22_p0 = scmp.ge.s32.totalorder %s21_s14, 2  ;;  %p61_p1 = scmp.ne.s32.totalorder %s476_s10, %s472_s9 }
   0x5   : > { %p62_p2 = scmp.eq.s32.totalorder %s488_s13, 0  ;;  %p93_p4 = scmp.eq.s32.totalorder %s388_s15, 1 }
   0x6   : > { %s593_s14 = smov (%p22_p0, %s21_s14), 0  ;;  %s54_s17 = sadd.s32 1, %s476_s10 }
   0x7   : > { %p63_p3 = por %p62_p2, %p61_p1  ;;  %s50_s16 = ssub.s32 %s484_s12, %s593_s14 }
   0x8   : > { %p52_p5 = scmp.eq.s32.totalorder %s50_s16, 0  ;;  %p544_p6 = por %p93_p4, %p61_p1 }
   0x9   : > { %p391_p7 = scmp.ge.s32.totalorder %s488_s13, 2 }
   0xa   : > { %s549_s19 = scalar_select %p52_p5, %s476_s10, %s54_s17  }
   0xb   : > { %118 = sbr.rel (%p391_p7) target bundleno = 25 (0x19), region = 20 }
  0x12   : > { %121 = sbr.rel (!%p63_p3) target bundleno = 25 (0x19), region = 24  ;;  %s123_s20 = sand.u32 (%p63_p3), 1, %s476_s10  }
  0x13   : > { %s393_s21 = sshll.u32 (%p63_p3), %s484_s12, 2  ;;  %s392_s22 = sshll.u32 (%p63_p3), %s123_s20, 3 }
  0x14   : > { %s130_s25 = scalar_lea.vmem (%p63_p3), %s585_s1, %s393_s21  ;;  %s125_s26 = scalar_lea.vmem (%p63_p3), [#allocation2], %s392_s22 }
  0x15   : > { %v146_v0 = vld [vmem:[%s130_s25] sm:$0xf] (%p63_p3)  ;;  %v148_v1 = vld [vmem:[%s130_s25 + $0x8] sm:$0xf] (%p63_p3) }
  0x16   : > { %147 = vst [vmem:[%s125_s26] sm:$0xf] (%p63_p3), %v146_v0  ;;  %149 = vst [vmem:[%s125_s26 + $0x4] sm:$0xf] (%p63_p3), %v148_v1 }
  0x19 PF: > { %p394_p8 = scmp.ge.s32.totalorder %s488_s13, 1  ;;  %p175_p9 = scmp.lt.s32.totalorder %s488_s13, 3 }
  0x1b   : > { %p176_p10 = pnand %p394_p8, %p175_p9 }
  0x1c   : > { %v204_v2 = vld [vmem:[%s584_s0] sm:$0x3] (!%p176_p10)  ;;  %v490_v3 = vmov (!%p176_p10), 0   ;;  %v491_v4 = vmov (!%p176_p10), 2   ;;  %v492_v5 = vmov (!%p176_p10), 1   ;;  %v493_v6 = vmov (!%p176_p10), 3  }
  0x1d   : > { %179 = sbr.rel (%p176_p10) target bundleno = 180 (0xb4), region = 65  ;;  %445 = vset.pattern.permute.xlu0 (!%p176_p10), %v490_v3  ;;  %447 = vset.pattern.permute.xlu1 (!%p176_p10), %v491_v4  ;;  %v212_v7 = vlaneseq (!%p176_p10)  ;;  %s182_s29 = sand.u32 (!%p176_p10), 1, %s472_s9  }
  0x1e   : > { %209 = vperm.xlu0 (!%p176_p10), %445, %v204_v2   ;;  %239 = vperm.xlu1 (!%p176_p10), %447, %v204_v2   ;;  %s395_s30 = sshll.u32 (!%p176_p10), %s182_s29, 3  ;;  %s396_s4 = sshll.u32 (!%p176_p10), %s182_s29, 2 }
  0x1f   : > { %v213_v8 = vshrl.u32 (!%p176_p10), %v212_v7, 7  ;;  %s184_s3 = scalar_lea.vmem (!%p176_p10), [#allocation2], %s395_s30  ;;  %s201_s5 = scalar_lea.vmem (!%p176_p10), [#allocation3], %s396_s4 }
  0x20   : > { %v205_v11 = vld [vmem:[%s184_s3] sm:$0xf] (!%p176_p10)  ;;  %v206_v12 = vld [vmem:[%s184_s3 + $0x4] sm:$0xf] (!%p176_p10) }
  0x21   : > { %v214_v9 = vsub.s32 (!%p176_p10), 0, %v213_v8  ;;  %v228_v10 = vsub.s32 (!%p176_p10), 1, %v213_v8  ;;  %v244_v13 = vsub.s32 (!%p176_p10), 2, %v213_v8  ;;  %v260_v16 = vsub.s32 (!%p176_p10), 3, %v213_v8 }
  0x22   : > { %446 = vset.pattern.permute.xlu0 (!%p176_p10), %v492_v5  ;;  %448 = vset.pattern.permute.xlu1 (!%p176_p10), %v493_v6 }
  0x23   : > { %223 = vperm.xlu0 (!%p176_p10), %446, %v204_v2   ;;  %255 = vperm.xlu1 (!%p176_p10), %448, %v204_v2   ;;  %v215_v17 = vrot.slane (!%p176_p10), %v205_v11, %v214_v9  ;;  %v219_v18 = vrot.slane (!%p176_p10), %v206_v12, %v214_v9  ;;  %v229_v19 = vrot.slane (!%p176_p10), %v205_v11, %v228_v10 }
  0x24   : > { %v233_v20 = vrot.slane %v206_v12, %v228_v10  ;;  %v245_v21 = vrot.slane %v205_v11, %v244_v13  ;;  %v249_v22 = vrot.slane %v206_v12, %v244_v13  ;;  %v261_v23 = vrot.slane %v205_v11, %v260_v16  ;;  %s398_s6 = sshll.u32 (%p544_p6), %s480_s11, 1 }
  0x25   : > { %v265_v24 = vrot.slane %v206_v12, %v260_v16  ;;  %s283_s9 = scalar_lea.vmem (%p544_p6), %s586_s2, %s398_s6 }
  0x27   : > { %449 = vset.pattern.permute.xlu0 %v493_v6 }
  0x9d   : > { %v210_v14 = vpop.permute.xlu0 %209  ;;  %v240_v15 = vpop.permute.xlu1 %239 }
  0x9e   : > { %v220_v27 = vmul.f32 %v215_v17, %v210_v14  ;;  %v221_v28 = vmul.f32 %v219_v18, %v210_v14  ;;  %v250_v31 = vmul.f32 %v245_v21, %v240_v15  ;;  %v251_v32 = vmul.f32 %v249_v22, %v240_v15 }
  0xa2   : > { %v224_v25 = vpop.permute.xlu0 %223  ;;  %v256_v26 = vpop.permute.xlu1 %255 }
  0xa3   : > { %v234_v29 = vmul.f32 %v229_v19, %v224_v25  ;;  %v235_v30 = vmul.f32 %v233_v20, %v224_v25  ;;  %v266_v35 = vmul.f32 %v261_v23, %v256_v26  ;;  %v267_v36 = vmul.f32 %v265_v24, %v256_v26 }
  0xa5   : > { %v236_v33 = vadd.f32 %v234_v29, %v220_v27  ;;  %v237_v34 = vadd.f32 %v235_v30, %v221_v28  ;;  %278 = sbr.rel (!%p544_p6) target bundleno = 180 (0xb4), region = 73 }
  0xa7   : > { %v252_v37 = vadd.f32 %v250_v31, %v236_v33  ;;  %v253_v38 = vadd.f32 %v251_v32, %v237_v34 }
  0xa9   : > { %v268_v39 = vadd.f32 %v266_v35, %v252_v37  ;;  %v269_v40 = vadd.f32 %v267_v36, %v253_v38 }
  0xab   : > { %270 = vst [vmem:[%s201_s5] sm:$0x3] %v268_v39  ;;  %271 = vst [vmem:[%s201_s5 + $0x2] sm:$0x3] %v269_v40 }
  0xb2   : > { %v299_v41 = vld [vmem:[%s201_s5] sm:$0x3]  ;;  %v301_v42 = vld [vmem:[%s201_s5 + $0x2] sm:$0x3] }
  0xb3   : > { %300 = vst [vmem:[%s283_s9] sm:$0x3] %v299_v41  ;;  %302 = vst [vmem:[%s283_s9 + $0x4] sm:$0x3] %v301_v42 }
  0xb4 PF: > { %s12_s13 = sadd.s32 1, %s488_s13   ;;  %s588_s9 = smov %s476_s10 }
  0xb5   : > { %p9_p11 = scmp.ge.s32.totalorder %s12_s13, 4   ;;  %s589_s10 = smov %s549_s19 }
  0xb6   : > { %s590_s11 = smov %s484_s12  ;;  %s591_s12 = smov %s593_s14 }
  0xb7   :  { %11 = sbr.rel (!%p9_p11) target bundleno = 3 (0x3), region = 138 }

</bundles_post_ra>
